<compile_context>
chip_gen: v6e
topology: v6e:2x2x1
jax: 0.10.0
libtpu: 0.0.40
codegen_flags: <defaults>
</compile_context>

<pallas_src>
import jax
import jax.numpy as jnp
from jax.experimental import pallas as pl
from jax.experimental.pallas import tpu as pltpu


def _leaky_relu(x, slope=0.01):
    # nn.LeakyReLU default negative_slope = 0.01
    return jnp.where(x > 0, x, slope * x)


def _round_up(n, m):
    return ((n + m - 1) // m) * m


def reward_net_kernel(x_ref, w1_ref, b1_ref, w2_ref, b2_ref, w3_ref, b3_ref, o_ref):
    # Cast x at the MXU input, inside the kernel (no separate wrapper-side astype pass
    # over x in HBM). No-op when x already arrives in the compute dtype.
    x = x_ref[...].astype(w1_ref.dtype)

    # ---- layer 1: MXU matmul with f32 accumulation; bias + LeakyReLU in f32 on the VPU.
    h = jnp.dot(x, w1_ref[...], preferred_element_type=jnp.float32)
    h = _leaky_relu(h + b1_ref[...])            # (1, H) bias broadcasts across sublanes

    # ---- layer 2: cast activations only at the matmul input (no-op for f32 compute).
    h = jnp.dot(h.astype(w2_ref.dtype), w2_ref[...], preferred_element_type=jnp.float32)
    h = _leaky_relu(h + b2_ref[...])

    # ---- scalar head: avoid a 1-column MXU pass; VPU elementwise mul + XLU lane reduce.
    # w3 is passed as a (1, H) row; this is exactly h @ w3 + b3.
    col = jnp.sum(h * w3_ref[...], axis=-1, keepdims=True)   # (block_b, 1)
    # TODO(synk): output stays (block_b, 1) (sublane-oriented masked stores); a lane-dense
    # (1, block_b) layout would need a sublane->lane transpose and the output bytes are
    # negligible next to the streamed x, so it is not worth the extra XLU pass here.
    o_ref[...] = (col + b3_ref[...]).astype(o_ref.dtype)


def _padded_tile_bytes(shape, dtype):
    """Conservative VMEM footprint of one buffer of `shape` ((8,128) tile padding)."""
    if len(shape) == 1:
        shape = (1,) + tuple(shape)
    lead = 1
    for d in shape[:-2]:
        lead *= int(d)
    rows = _round_up(int(shape[-2]), 8)
    cols = _round_up(int(shape[-1]), 128)
    return lead * rows * cols * jnp.dtype(dtype).itemsize


def _build_forward(B, D, H, x_dtype, compute_dtype, block_b, grid, single_buffer_weights):
    def const_spec(shape):
        index_map = lambda i, _n=len(shape): (0,) * _n
        if single_buffer_weights:
            # Grid-invariant block: one VMEM buffer is enough (skip double buffering).
            return pl.BlockSpec(shape, index_map, pipeline_mode=pl.Buffered(1))
        return pl.BlockSpec(shape, index_map)

    wbuf = 1 if single_buffer_weights else 2
    vmem_needed = (
        wbuf * (_padded_tile_bytes((D, H), compute_dtype)
                + _padded_tile_bytes((H, H), compute_dtype)
                + 3 * _padded_tile_bytes((1, H), jnp.float32)
                + _padded_tile_bytes((1, 1), jnp.float32))
        + 2 * _padded_tile_bytes((block_b, D), x_dtype)       # double-buffered x tile
        + 2 * _padded_tile_bytes((block_b, 1), jnp.float32)   # double-buffered out tile
    )
    vmem_limit = int(min(128 << 20, max(2 * vmem_needed + (4 << 20), 32 << 20)))

    return pl.pallas_call(
        reward_net_kernel,
        out_shape=jax.ShapeDtypeStruct((B, 1), jnp.float32),
        grid_spec=pltpu.PrefetchScalarGridSpec(
            num_scalar_prefetch=0,
            grid=grid,
            in_specs=[
                pl.BlockSpec((block_b, D), lambda i: (i, 0)),  # x tile over batch
                const_spec((D, H)),   # W1 (resident)
                const_spec((1, H)),   # b1
                const_spec((H, H)),   # W2 (resident)
                const_spec((1, H)),   # b2
                const_spec((1, H)),   # w3 as a row (VPU/XLU head)
                const_spec((1, 1)),   # b3
            ],
            out_specs=pl.BlockSpec((block_b, 1), lambda i: (i, 0)),
        ),
        compiler_params=pltpu.CompilerParams(
            dimension_semantics=("parallel",),
            vmem_limit_bytes=vmem_limit,
        ),
    )


def reward_net_forward(x, params, *, block_b=None, compute_dtype=jnp.bfloat16):
    """x: [B, input_dim] -> [B, 1] float32 (matches RewardNet.forward, num_layers=2)."""
    w1, b1, w2, b2, w3, b3 = params
    B, D = x.shape
    H = w1.shape[1]
    assert w1.shape == (D, H) and w2.shape == (H, H) and w3.shape == (H, 1)
    # TODO(synk): if D or H grow past a few K, add a K/N tiling grid axis for W1/W2 with a
    # VMEM f32 accumulator — the whole-weight-resident design assumes weights fit in VMEM
    # (64 MiB physical on v7x).

    if block_b is None:
        # Balanced batch tiles: multiple of 8 sublanes, at most 512 rows, and >= 2 grid
        # steps for B > 64 so the "parallel" axis can shard across v7x's two TensorCores.
        # Balancing keeps the ragged tail to a handful of rows instead of hundreds.
        min_tiles = 2 if B > 64 else 1
        n_tiles = max(min_tiles, pl.cdiv(B, 512))
        block_b = min(_round_up(pl.cdiv(B, n_tiles), 8), _round_up(B, 8))
    assert block_b % 8 == 0, "block_b must be a multiple of 8 (sublane constraint)"
    grid = (pl.cdiv(B, block_b),)   # ragged last block handled by Pallas, no jnp.pad of x

    # Weights to the MXU compute dtype (tiny, grid-invariant arrays — cheap). x itself is
    # streamed in its incoming dtype and cast inside the kernel; hand the wrapper bf16 x
    # to halve the streamed HBM bytes on this bandwidth-bound kernel.
    w1_c = w1.astype(compute_dtype)
    w2_c = w2.astype(compute_dtype)
    w3_row = w3.reshape(1, H).astype(jnp.float32)   # row layout for the VPU/XLU head
    b1_f = b1.reshape(1, H).astype(jnp.float32)
    b2_f = b2.reshape(1, H).astype(jnp.float32)
    b3_f = b3.reshape(1, 1).astype(jnp.float32)

    args = (x, w1_c, b1_f, w2_c, b2_f, w3_row, b3_f)
    try:
        fwd = _build_forward(B, D, H, x.dtype, compute_dtype, block_b, grid,
                             single_buffer_weights=True)
        return fwd(*args)
    except Exception:
        # pl.Buffered(1) (single-buffered grid-invariant inputs) unsupported on this JAX
        # version -> fall back to the default double-buffered pipeline.
        fwd = _build_forward(B, D, H, x.dtype, compute_dtype, block_b, grid,
                             single_buffer_weights=False)
        return fwd(*args)


def init_reward_net_params(key, input_dim, hidden_dim):
    """Deterministic init mimicking PyTorch nn.Linear default (uniform +/- 1/sqrt(fan_in))."""
    ks = jax.random.split(key, 6)

    def lin(kw, kb, fan_in, fan_out):
        bound = 1.0 / jnp.sqrt(jnp.float32(fan_in))
        w = jax.random.uniform(kw, (fan_in, fan_out), jnp.float32, -bound, bound)
        b = jax.random.uniform(kb, (1, fan_out), jnp.float32, -bound, bound)
        return w, b

    w1, b1 = lin(ks[0], ks[1], input_dim, hidden_dim)
    w2, b2 = lin(ks[2], ks[3], hidden_dim, hidden_dim)
    w3, b3 = lin(ks[4], ks[5], hidden_dim, 1)
    return (w1, b1, w2, b2, w3, b3)


def reward_net_reference(x, params, compute_dtype=jnp.float32):
    """Pure-JAX reference; `compute_dtype` mirrors the kernel's MXU-input rounding."""
    hi = jax.lax.Precision.HIGHEST
    w1, b1, w2, b2, w3, b3 = params
    c = lambda a: a.astype(compute_dtype).astype(jnp.float32)
    h = _leaky_relu(jnp.dot(c(x), c(w1), precision=hi) + b1)
    h = _leaky_relu(jnp.dot(c(h), c(w2), precision=hi) + b2)
    return jnp.dot(h, w3, precision=hi) + b3


if __name__ == "__main__":
    key = jax.random.PRNGKey(0)
    k_x1, k_p1, k_x2, k_p2 = jax.random.split(key, 4)

    # --- small test: ragged single block (B=10 inside a 16-row tile), bf16 MXU inputs ---
    batch, input_dim, hidden_dim = 10, 32, 128
    x = jax.random.normal(k_x1, (batch, input_dim), jnp.float32)
    params = init_reward_net_params(k_p1, input_dim, hidden_dim)

    out = jax.block_until_ready(reward_net_forward(x, params))
    ref = reward_net_reference(x, params, compute_dtype=jnp.bfloat16)
    assert out.shape == (batch, 1)
    assert jnp.allclose(out, ref, atol=5e-3, rtol=5e-3), float(jnp.max(jnp.abs(out - ref)))

    # full-f32 compute path against the exact f32 reference
    out_f32 = jax.block_until_ready(
        reward_net_forward(x, params, compute_dtype=jnp.float32))
    ref_f32 = reward_net_reference(x, params)
    assert jnp.allclose(out_f32, ref_f32, atol=1e-4, rtol=1e-4)

    # --- larger test: two balanced grid steps (block_b=304) with a small ragged tail ----
    batch2, input_dim2, hidden_dim2 = 600, 64, 128
    x2 = jax.random.normal(k_x2, (batch2, input_dim2), jnp.float32)
    params2 = init_reward_net_params(k_p2, input_dim2, hidden_dim2)

    out2 = jax.block_until_ready(reward_net_forward(x2, params2))
    ref2 = reward_net_reference(x2, params2, compute_dtype=jnp.bfloat16)
    assert out2.shape == (batch2, 1)
    assert jnp.allclose(out2, ref2, atol=5e-3, rtol=5e-3), float(jnp.max(jnp.abs(out2 - ref2)))

    print("KERNEL_OK")
</pallas_src>

<mosaic_0001>
module attributes {stable_mosaic.version = 11 : i64} {
  func.func @reward_net_kernel(%arg0: i32, %arg1: memref<16x32xf32, #tpu.memory_space<vmem>>, %arg2: memref<32x128xbf16, #tpu.memory_space<vmem>>, %arg3: memref<1x128xf32, #tpu.memory_space<vmem>>, %arg4: memref<128x128xbf16, #tpu.memory_space<vmem>>, %arg5: memref<1x128xf32, #tpu.memory_space<vmem>>, %arg6: memref<1x128xf32, #tpu.memory_space<vmem>>, %arg7: memref<1x1xf32, #tpu.memory_space<vmem>>, %arg8: memref<16x1xf32, #tpu.memory_space<vmem>>) attributes {dimension_semantics = [#tpu.dimension_semantics<parallel>], iteration_bounds = array<i64: 1>, scalar_prefetch = 0 : i64, scratch_operands = 0 : i64, tpu.core_type = #tpu.core_type<tc>, window_params = [{transform_indices = @transform_0, window_bounds = array<i64: 16, 32>}, {pipeline_mode = #tpu.pipeline_mode<synchronous>, transform_indices = @transform_1, window_bounds = array<i64: 32, 128>}, {pipeline_mode = #tpu.pipeline_mode<synchronous>, transform_indices = @transform_2, window_bounds = array<i64: 1, 128>}, {pipeline_mode = #tpu.pipeline_mode<synchronous>, transform_indices = @transform_3, window_bounds = array<i64: 128, 128>}, {pipeline_mode = #tpu.pipeline_mode<synchronous>, transform_indices = @transform_4, window_bounds = array<i64: 1, 128>}, {pipeline_mode = #tpu.pipeline_mode<synchronous>, transform_indices = @transform_5, window_bounds = array<i64: 1, 128>}, {pipeline_mode = #tpu.pipeline_mode<synchronous>, transform_indices = @transform_6, window_bounds = array<i64: 1, 1>}, {transform_indices = @transform_7, window_bounds = array<i64: 16, 1>}]} {
    %c0 = arith.constant 0 : index
    %c0_0 = arith.constant 0 : index
    %0 = vector.load %arg1[%c0, %c0_0] : memref<16x32xf32, #tpu.memory_space<vmem>>, vector<16x32xf32>
    %1 = arith.truncf %0 : vector<16x32xf32> to vector<16x32xbf16>
    %c0_1 = arith.constant 0 : index
    %c0_2 = arith.constant 0 : index
    %2 = vector.load %arg2[%c0_1, %c0_2] : memref<32x128xbf16, #tpu.memory_space<vmem>>, vector<32x128xbf16>
    %cst = arith.constant dense<0.000000e+00> : vector<16x128xf32>
    %3 = tpu.matmul %1, %2, %cst {dimension_numbers = #tpu.dot_dimension_numbers<[1], [0], [0], [1], [0, 0, 1, 1], [], []>} : vector<16x32xbf16>, vector<32x128xbf16>, vector<16x128xf32> -> vector<16x128xf32>
    %c0_3 = arith.constant 0 : index
    %c0_4 = arith.constant 0 : index
    %4 = vector.load %arg3[%c0_3, %c0_4] : memref<1x128xf32, #tpu.memory_space<vmem>>, vector<1x128xf32>
    %5 = vector.broadcast %4 : vector<1x128xf32> to vector<16x128xf32>
    %6 = arith.addf %3, %5 : vector<16x128xf32>
    %cst_5 = arith.constant 0.000000e+00 : f32
    %7 = vector.broadcast %cst_5 : f32 to vector<16x128xf32>
    %8 = arith.cmpf ogt, %6, %7 : vector<16x128xf32>
    %cst_6 = arith.constant 0.00999999977 : f32
    %9 = vector.broadcast %cst_6 : f32 to vector<16x128xf32>
    %10 = arith.mulf %9, %6 : vector<16x128xf32>
    %11 = arith.select %8, %6, %10 : vector<16x128xi1>, vector<16x128xf32>
    %12 = arith.truncf %11 : vector<16x128xf32> to vector<16x128xbf16>
    %c0_7 = arith.constant 0 : index
    %c0_8 = arith.constant 0 : index
    %13 = vector.load %arg4[%c0_7, %c0_8] : memref<128x128xbf16, #tpu.memory_space<vmem>>, vector<128x128xbf16>
    %cst_9 = arith.constant dense<0.000000e+00> : vector<16x128xf32>
    %14 = tpu.matmul %12, %13, %cst_9 {dimension_numbers = #tpu.dot_dimension_numbers<[1], [0], [0], [1], [0, 0, 1, 1], [], []>} : vector<16x128xbf16>, vector<128x128xbf16>, vector<16x128xf32> -> vector<16x128xf32>
    %c0_10 = arith.constant 0 : index
    %c0_11 = arith.constant 0 : index
    %15 = vector.load %arg5[%c0_10, %c0_11] : memref<1x128xf32, #tpu.memory_space<vmem>>, vector<1x128xf32>
    %16 = vector.broadcast %15 : vector<1x128xf32> to vector<16x128xf32>
    %17 = arith.addf %14, %16 : vector<16x128xf32>
    %cst_12 = arith.constant 0.000000e+00 : f32
    %18 = vector.broadcast %cst_12 : f32 to vector<16x128xf32>
    %19 = arith.cmpf ogt, %17, %18 : vector<16x128xf32>
    %cst_13 = arith.constant 0.00999999977 : f32
    %20 = vector.broadcast %cst_13 : f32 to vector<16x128xf32>
    %21 = arith.mulf %20, %17 : vector<16x128xf32>
    %22 = arith.select %19, %17, %21 : vector<16x128xi1>, vector<16x128xf32>
    %c0_14 = arith.constant 0 : index
    %c0_15 = arith.constant 0 : index
    %23 = vector.load %arg6[%c0_14, %c0_15] : memref<1x128xf32, #tpu.memory_space<vmem>>, vector<1x128xf32>
    %24 = vector.broadcast %23 : vector<1x128xf32> to vector<16x128xf32>
    %25 = arith.mulf %22, %24 : vector<16x128xf32>
    %cst_16 = arith.constant dense<0.000000e+00> : vector<16xf32>
    %26 = vector.multi_reduction <add>, %25, %cst_16 [1] : vector<16x128xf32> to vector<16xf32>
    %27 = vector.shape_cast %26 : vector<16xf32> to vector<16x1xf32>
    %c0_17 = arith.constant 0 : index
    %c0_18 = arith.constant 0 : index
    %28 = vector.load %arg7[%c0_17, %c0_18] : memref<1x1xf32, #tpu.memory_space<vmem>>, vector<1x1xf32>
    %29 = vector.broadcast %28 : vector<1x1xf32> to vector<16x1xf32>
    %30 = arith.addf %27, %29 : vector<16x1xf32>
    %c0_19 = arith.constant 0 : index
    %c0_20 = arith.constant 0 : index
    %31 = vector.load %arg8[%c0_19, %c0_20] : memref<16x1xf32, #tpu.memory_space<vmem>>, vector<16x1xf32>
    tpu.vector_store %arg8[%c0_19, %c0_20], %30 {strides = array<i32>} : memref<16x1xf32, #tpu.memory_space<vmem>>, vector<16x1xf32>,
    return
  }
  func.func @transform_0(%arg0: i32) -> (i32, i32) {
    %c0_i32 = arith.constant 0 : i32
    %c0_i32_0 = arith.constant 0 : i32
    return %arg0, %c0_i32 : i32, i32
  }
  func.func @transform_1(%arg0: i32) -> (i32, i32) {
    %c0_i32 = arith.constant 0 : i32
    %c0_i32_0 = arith.constant 0 : i32
    %c0_i32_1 = arith.constant 0 : i32
    return %c0_i32, %c0_i32_0 : i32, i32
  }
  func.func @transform_2(%arg0: i32) -> (i32, i32) {
    %c0_i32 = arith.constant 0 : i32
    %c0_i32_0 = arith.constant 0 : i32
    %c0_i32_1 = arith.constant 0 : i32
    return %c0_i32, %c0_i32_0 : i32, i32
  }
  func.func @transform_3(%arg0: i32) -> (i32, i32) {
    %c0_i32 = arith.constant 0 : i32
    %c0_i32_0 = arith.constant 0 : i32
    %c0_i32_1 = arith.constant 0 : i32
    return %c0_i32, %c0_i32_0 : i32, i32
  }
  func.func @transform_4(%arg0: i32) -> (i32, i32) {
    %c0_i32 = arith.constant 0 : i32
    %c0_i32_0 = arith.constant 0 : i32
    %c0_i32_1 = arith.constant 0 : i32
    return %c0_i32, %c0_i32_0 : i32, i32
  }
  func.func @transform_5(%arg0: i32) -> (i32, i32) {
    %c0_i32 = arith.constant 0 : i32
    %c0_i32_0 = arith.constant 0 : i32
    %c0_i32_1 = arith.constant 0 : i32
    return %c0_i32, %c0_i32_0 : i32, i32
  }
  func.func @transform_6(%arg0: i32) -> (i32, i32) {
    %c0_i32 = arith.constant 0 : i32
    %c0_i32_0 = arith.constant 0 : i32
    %c0_i32_1 = arith.constant 0 : i32
    return %c0_i32, %c0_i32_0 : i32, i32
  }
  func.func @transform_7(%arg0: i32) -> (i32, i32) {
    %c0_i32 = arith.constant 0 : i32
    %c0_i32_0 = arith.constant 0 : i32
    return %arg0, %c0_i32 : i32, i32
  }
}

module attributes {stable_mosaic.version = 11 : i64} {
  func.func @reward_net_kernel(%arg0: i32, %arg1: memref<16x32xf32, #tpu.memory_space<vmem>>, %arg2: memref<32x128xbf16, #tpu.memory_space<vmem>>, %arg3: memref<1x128xf32, #tpu.memory_space<vmem>>, %arg4: memref<128x128xbf16, #tpu.memory_space<vmem>>, %arg5: memref<1x128xf32, #tpu.memory_space<vmem>>, %arg6: memref<1x128xf32, #tpu.memory_space<vmem>>, %arg7: memref<1x1xf32, #tpu.memory_space<vmem>>, %arg8: memref<16x1xf32, #tpu.memory_space<vmem>>) attributes {dimension_semantics = [#tpu.dimension_semantics<parallel>], iteration_bounds = array<i64: 1>, scalar_prefetch = 0 : i64, scratch_operands = 0 : i64, tpu.core_type = #tpu.core_type<tc>, window_params = [{transform_indices = @transform_0, window_bounds = array<i64: 16, 32>}, {pipeline_mode = #tpu.pipeline_mode<synchronous>, transform_indices = @transform_1, window_bounds = array<i64: 32, 128>}, {pipeline_mode = #tpu.pipeline_mode<synchronous>, transform_indices = @transform_2, window_bounds = array<i64: 1, 128>}, {pipeline_mode = #tpu.pipeline_mode<synchronous>, transform_indices = @transform_3, window_bounds = array<i64: 128, 128>}, {pipeline_mode = #tpu.pipeline_mode<synchronous>, transform_indices = @transform_4, window_bounds = array<i64: 1, 128>}, {pipeline_mode = #tpu.pipeline_mode<synchronous>, transform_indices = @transform_5, window_bounds = array<i64: 1, 128>}, {pipeline_mode = #tpu.pipeline_mode<synchronous>, transform_indices = @transform_6, window_bounds = array<i64: 1, 1>}, {transform_indices = @transform_7, window_bounds = array<i64: 16, 1>}]} {
    %c0 = arith.constant 0 : index
    %c0_0 = arith.constant 0 : index
    %0 = vector.load %arg1[%c0, %c0_0] : memref<16x32xf32, #tpu.memory_space<vmem>>, vector<16x32xf32>
    %1 = arith.truncf %0 : vector<16x32xf32> to vector<16x32xbf16>
    %c0_1 = arith.constant 0 : index
    %c0_2 = arith.constant 0 : index
    %2 = vector.load %arg2[%c0_1, %c0_2] : memref<32x128xbf16, #tpu.memory_space<vmem>>, vector<32x128xbf16>
    %cst = arith.constant dense<0.000000e+00> : vector<16x128xf32>
    %3 = tpu.matmul %1, %2, %cst {dimension_numbers = #tpu.dot_dimension_numbers<[1], [0], [0], [1], [0, 0, 1, 1], [], []>} : vector<16x32xbf16>, vector<32x128xbf16>, vector<16x128xf32> -> vector<16x128xf32>
    %c0_3 = arith.constant 0 : index
    %c0_4 = arith.constant 0 : index
    %4 = vector.load %arg3[%c0_3, %c0_4] : memref<1x128xf32, #tpu.memory_space<vmem>>, vector<1x128xf32>
    %5 = vector.broadcast %4 : vector<1x128xf32> to vector<16x128xf32>
    %6 = arith.addf %3, %5 : vector<16x128xf32>
    %cst_5 = arith.constant 0.000000e+00 : f32
    %7 = vector.broadcast %cst_5 : f32 to vector<16x128xf32>
    %8 = arith.cmpf ogt, %6, %7 : vector<16x128xf32>
    %cst_6 = arith.constant 0.00999999977 : f32
    %9 = vector.broadcast %cst_6 : f32 to vector<16x128xf32>
    %10 = arith.mulf %9, %6 : vector<16x128xf32>
    %11 = arith.select %8, %6, %10 : vector<16x128xi1>, vector<16x128xf32>
    %12 = arith.truncf %11 : vector<16x128xf32> to vector<16x128xbf16>
    %c0_7 = arith.constant 0 : index
    %c0_8 = arith.constant 0 : index
    %13 = vector.load %arg4[%c0_7, %c0_8] : memref<128x128xbf16, #tpu.memory_space<vmem>>, vector<128x128xbf16>
    %cst_9 = arith.constant dense<0.000000e+00> : vector<16x128xf32>
    %14 = tpu.matmul %12, %13, %cst_9 {dimension_numbers = #tpu.dot_dimension_numbers<[1], [0], [0], [1], [0, 0, 1, 1], [], []>} : vector<16x128xbf16>, vector<128x128xbf16>, vector<16x128xf32> -> vector<16x128xf32>
    %c0_10 = arith.constant 0 : index
    %c0_11 = arith.constant 0 : index
    %15 = vector.load %arg5[%c0_10, %c0_11] : memref<1x128xf32, #tpu.memory_space<vmem>>, vector<1x128xf32>
    %16 = vector.broadcast %15 : vector<1x128xf32> to vector<16x128xf32>
    %17 = arith.addf %14, %16 : vector<16x128xf32>
    %cst_12 = arith.constant 0.000000e+00 : f32
    %18 = vector.broadcast %cst_12 : f32 to vector<16x128xf32>
    %19 = arith.cmpf ogt, %17, %18 : vector<16x128xf32>
    %cst_13 = arith.constant 0.00999999977 : f32
    %20 = vector.broadcast %cst_13 : f32 to vector<16x128xf32>
    %21 = arith.mulf %20, %17 : vector<16x128xf32>
    %22 = arith.select %19, %17, %21 : vector<16x128xi1>, vector<16x128xf32>
    %c0_14 = arith.constant 0 : index
    %c0_15 = arith.constant 0 : index
    %23 = vector.load %arg6[%c0_14, %c0_15] : memref<1x128xf32, #tpu.memory_space<vmem>>, vector<1x128xf32>
    %24 = vector.broadcast %23 : vector<1x128xf32> to vector<16x128xf32>
    %25 = arith.mulf %22, %24 : vector<16x128xf32>
    %cst_16 = arith.constant dense<0.000000e+00> : vector<16xf32>
    %26 = vector.multi_reduction <add>, %25, %cst_16 [1] : vector<16x128xf32> to vector<16xf32>
    %27 = vector.shape_cast %26 : vector<16xf32> to vector<16x1xf32>
    %c0_17 = arith.constant 0 : index
    %c0_18 = arith.constant 0 : index
    %28 = vector.load %arg7[%c0_17, %c0_18] : memref<1x1xf32, #tpu.memory_space<vmem>>, vector<1x1xf32>
    %29 = vector.broadcast %28 : vector<1x1xf32> to vector<16x1xf32>
    %30 = arith.addf %27, %29 : vector<16x1xf32>
    %c0_19 = arith.constant 0 : index
    %c0_20 = arith.constant 0 : index
    %31 = vector.load %arg8[%c0_19, %c0_20] : memref<16x1xf32, #tpu.memory_space<vmem>>, vector<16x1xf32>
    tpu.vector_store %arg8[%c0_19, %c0_20], %30 {strides = array<i32>} : memref<16x1xf32, #tpu.memory_space<vmem>>, vector<16x1xf32>,
    return
  }
  func.func @transform_0(%arg0: i32) -> (i32, i32) {
    %c0_i32 = arith.constant 0 : i32
    %c0_i32_0 = arith.constant 0 : i32
    return %arg0, %c0_i32 : i32, i32
  }
  func.func @transform_1(%arg0: i32) -> (i32, i32) {
    %c0_i32 = arith.constant 0 : i32
    %c0_i32_0 = arith.constant 0 : i32
    %c0_i32_1 = arith.constant 0 : i32
    return %c0_i32, %c0_i32_0 : i32, i32
  }
  func.func @transform_2(%arg0: i32) -> (i32, i32) {
    %c0_i32 = arith.constant 0 : i32
    %c0_i32_0 = arith.constant 0 : i32
    %c0_i32_1 = arith.constant 0 : i32
    return %c0_i32, %c0_i32_0 : i32, i32
  }
  func.func @transform_3(%arg0: i32) -> (i32, i32) {
    %c0_i32 = arith.constant 0 : i32
    %c0_i32_0 = arith.constant 0 : i32
    %c0_i32_1 = arith.constant 0 : i32
    return %c0_i32, %c0_i32_0 : i32, i32
  }
  func.func @transform_4(%arg0: i32) -> (i32, i32) {
    %c0_i32 = arith.constant 0 : i32
    %c0_i32_0 = arith.constant 0 : i32
    %c0_i32_1 = arith.constant 0 : i32
    return %c0_i32, %c0_i32_0 : i32, i32
  }
  func.func @transform_5(%arg0: i32) -> (i32, i32) {
    %c0_i32 = arith.constant 0 : i32
    %c0_i32_0 = arith.constant 0 : i32
    %c0_i32_1 = arith.constant 0 : i32
    return %c0_i32, %c0_i32_0 : i32, i32
  }
  func.func @transform_6(%arg0: i32) -> (i32, i32) {
    %c0_i32 = arith.constant 0 : i32
    %c0_i32_0 = arith.constant 0 : i32
    %c0_i32_1 = arith.constant 0 : i32
    return %c0_i32, %c0_i32_0 : i32, i32
  }
  func.func @transform_7(%arg0: i32) -> (i32, i32) {
    %c0_i32 = arith.constant 0 : i32
    %c0_i32_0 = arith.constant 0 : i32
    return %arg0, %c0_i32 : i32, i32
  }
}

</mosaic_0001>

<bundles_post_ra>
// kernel: tpu_custom_call.1
= control target key start
LH: loop header
LB: loop body
LE: loop exit
PB: predicated region body
PF: predicated region fallthrough
CT: control target
= control target key end

     0   :  { %s511_s0 = inlined_call_operand.hbm [shape: f32[10,32], index: 0, kind: input, shape index: {}]   ;;  %s512_s1 = inlined_call_operand.hbm [shape: bf16[32,128], index: 1, kind: input, shape index: {}]   ;;  %s513_s2 = inlined_call_operand.vmem [shape: f32[1,128], index: 2, kind: input, shape index: {}]   ;;  %s514_s3 = inlined_call_operand.hbm [shape: bf16[128,128], index: 3, kind: input, shape index: {}]   ;;  %s515_s4 = inlined_call_operand.vmem [shape: f32[1,128], index: 4, kind: input, shape index: {}]   ;;  %s516_s5 = inlined_call_operand.vmem [shape: f32[1,128], index: 5, kind: input, shape index: {}]   ;;  %s517_s6 = inlined_call_operand.<no memory space> [shape: f32[1,1], index: 6, kind: input, shape index: {}]   ;;  %s518_s7 = inlined_call_operand.vmem [shape: f32[10,1], index: 7, kind: output, shape index: {}]  }
   0x1   :  { %v12_v0 = vstv %s517_s6 }
   0x2   :  { %13 = vst [vmem:[#allocation2] sm:$0x1] %v12_v0 }
   0x3   :  { %14 = vsyncpa [#allocation4], 0 }
   0x4   :  { %15 = vsyncpa [#allocation6], 0  ;;  %s435_s26 = smov [#allocation5]  }
   0x5   :  { %s33_s27 = sshll.u32 %s435_s26, 4  ;;  %s34_s27 = int_to_ptr.vmem [resolvable:$true] %s33_s27 }
   0x6   :  { %s379_s28 = scalar_lea.vmem %s34_s27, 256  ;;  %p384_p1 = scmp.lt.s32.totalorder %s34_s27, %s34_s27 }
   0x7   :  { %p380_p0 = scmp.ne.s32.totalorder %s34_s27, %s379_s28  ;;  %p385_p2 = scmp.lt.s32.totalorder %s379_s28, %s379_s28 }
   0x9   :  { %p386_p3 = por %p385_p2, %p384_p1 }
   0xb   :  { %p387_p4 = pnand %p386_p3, %p380_p0 }
   0xd   :  { %390 = shalt.err (!%p387_p4)
}
   0xe   :  { %s436_s29 = smov 64   ;;  %s437_s30 = smov 4  }
   0xf   :  { %39 = dma.hbm_to_vmem [thread:$0]  %s512_s1, 256, %s34_s27, [#allocation6], %s436_s29, %s436_s29, %s437_s30  }
  0x10   :  { %s438_s6 = smov [#allocation3]  }
  0x11   :  { %s21_s10 = sshll.u32 %s438_s6, 4  ;;  %s22_s10 = int_to_ptr.vmem [resolvable:$true] %s21_s10 }
  0x12   :  { %s399_s11 = scalar_lea.vmem %s22_s10, 256  ;;  %p404_p6 = scmp.lt.s32.totalorder %s22_s10, %s22_s10 }
  0x13   :  { %p400_p5 = scmp.ne.s32.totalorder %s22_s10, %s399_s11  ;;  %p405_p7 = scmp.lt.s32.totalorder %s399_s11, %s399_s11 }
  0x15   :  { %p406_p8 = por %p405_p7, %p404_p6 }
  0x17   :  { %p407_p9 = pnand %p406_p8, %p400_p5 }
  0x19   :  { %410 = shalt.err (!%p407_p9)
}
  0x1a   :  { %s439_s12 = smov 128   ;;  %s440_s13 = smov 8  }
  0x1b   :  { %27 = dma.hbm_to_vmem [thread:$0]  %s511_s0, 256, %s22_s10, [#allocation4], %s439_s12, %s439_s12, %s440_s13  }
  0x1c   :  { %s441_s16 = smov [#allocation7]  }
  0x1d   :  { %s47_s17 = sshll.u32 %s441_s16, 4  ;;  %s48_s17 = int_to_ptr.vmem [resolvable:$true] %s47_s17 }
  0x1e   :  { %s419_s1 = scalar_lea.vmem %s48_s17, 1024  ;;  %p424_p11 = scmp.lt.s32.totalorder %s48_s17, %s48_s17 }
  0x1f   :  { %p420_p10 = scmp.ne.s32.totalorder %s48_s17, %s419_s1  ;;  %p425_p12 = scmp.lt.s32.totalorder %s419_s1, %s419_s1 }
  0x21   :  { %p426_p13 = por %p425_p12, %p424_p11 }
  0x23   :  { %p427_p0 = pnand %p426_p13, %p420_p10 }
  0x25   :  { %430 = shalt.err (!%p427_p0)
}
  0x26   :  { %53 = dma.hbm_to_vmem [thread:$0]  %s514_s3, 1024, %s48_s17, [#allocation6], %s436_s29, %s436_s29, %s437_s30  }
  0x27   :  { %431 = dma.done.wait [#allocation4], 256  }
  0x28   :  { %432 = vsyncadd [#allocation4], 4294967040 }
  0x29   :  { %433 = dma.done.wait [#allocation6], 1280  }
  0x2a   :  { %434 = vsyncadd [#allocation6], 4294966016  ;;  %v442_v1 = vmov 0.0   ;;  %vm443_vm0 = vmmov 0   ;;  %v361_v2 = vld [vmem:[#allocation5 + $0x8] sm:$0xff]   ;;  %v362_v3 = vld [vmem:[#allocation5] sm:$0xff]  }
  0x2b   :  { %324 = vmatprep.subr.bf16.mxu0 %v442_v1  ;;  %328 = vmatprep.mubr.msk.bf16.mxu0 %vm443_vm0, %v442_v1  ;;  %v70_v4 = vld [vmem:[#allocation3] sm:$0xff]  ;;  %v71_v5 = vld [vmem:[#allocation3 + $0x8] sm:$0xff]  ;;  %v363_v6 = vld [vmem:[#allocation7 + $0x38] sm:$0xff]   ;;  %vm96_vm1 = vcmask 261120   ;;  %vm288_vm6 = vcmask 7168  }
  0x2c   :  { %332 = vmatprep.subr.bf16.mxu1 %v442_v1  ;;  %348 = vmatprep.mubr.msk.bf16.mxu1 %vm443_vm0, %v442_v1  ;;  %v72_v7 = vpack.c.bf16 %v71_v5, %v70_v4  ;;  %v364_v8 = vld [vmem:[#allocation7 + $0x30] sm:$0xff]   ;;  %v365_v9 = vld [vmem:[#allocation7 + $0x28] sm:$0xff]   ;;  %v366_v10 = vld [vmem:[#allocation7 + $0x20] sm:$0xff]  }
  0x2d   :  { %325 = vmatpush3.bf16.msra.mxu0 %v361_v2  ;;  %333 = vmatpush3.bf16.msra.mxu1 %v363_v6  ;;  %v367_v11 = vld [vmem:[#allocation7 + $0x18] sm:$0xff]   ;;  %v368_v12 = vld [vmem:[#allocation7 + $0x10] sm:$0xff]   ;;  %v369_v13 = vld [vmem:[#allocation7 + $0x8] sm:$0xff]  }
  0x2e   :  { %326 = vmatprep.subr.bf16.mxu0 %v442_v1  ;;  %334 = vmatprep.subr.bf16.mxu1 %v442_v1  ;;  %v370_v14 = vld [vmem:[#allocation7] sm:$0xff]   ;;  %v297_v15 = vld [vmem:[%s513_s2] ss:$0 sm:$0xff] }
  0x2f   :  { %v301_v27 = vld [vmem:[%s515_s4] ss:$0 sm:$0xff] }
  0x30   :  { %v310_v32 = vld [vmem:[%s516_s5] ss:$0 sm:$0xff] }
  0x31   :  { %327 = vmatpush3.bf16.msra.mxu0 %v362_v3  ;;  %335 = vmatpush3.bf16.msra.mxu1 %v364_v8  ;;  %v311_v41 = vld [vmem:[#allocation2] ss:$0 sm:$0xff] }
  0x32   :  { %336 = vmatprep.subr.bf16.mxu1 %v442_v1 }
  0x34   :  { %329 = vmatmul.mubr.msk.bf16.vlgmr.msra.gmra.mxu0 %vm96_vm1, %v72_v7 }
  0x35   :  { %337 = vmatpush3.bf16.msra.mxu1 %v365_v9 }
  0x36   :  { %338 = vmatprep.subr.bf16.mxu1 %v442_v1 }
  0x39   :  { %339 = vmatpush3.bf16.msra.mxu1 %v366_v10 }
  0x3a   :  { %340 = vmatprep.subr.bf16.mxu1 %v442_v1 }
  0x3d   :  { %341 = vmatpush3.bf16.msra.mxu1 %v367_v11 }
  0x3e   :  { %342 = vmatprep.subr.bf16.mxu1 %v442_v1 }
  0x41   :  { %343 = vmatpush3.bf16.msra.mxu1 %v368_v12 }
  0x42   :  { %344 = vmatprep.subr.bf16.mxu1 %v442_v1 }
  0x45   :  { %345 = vmatpush3.bf16.msra.mxu1 %v369_v13 }
  0x46   :  { %346 = vmatprep.subr.bf16.mxu1 %v442_v1 }
  0x49   :  { %347 = vmatpush3.bf16.msra.mxu1 %v370_v14 }
  0xf4   :  { %v134_v16 = vpop.f32.mrf.mxu0 }
  0xf5   :  { %v135_v17 = vadd.f32 %v297_v15, %v134_v16 }
  0xf6   :  { %v330_v18 = vpop.f32.mrf.mxu0 }
  0xf7   :  { %v143_v20 = vmul.f32 0.01, %v135_v17  ;;  %vm141_vm2 = vcmp.gt.f32.partialorder %v135_v17, 0.0 }
  0xf8   :  { %v137_v19 = vpop.f32.mrf.mxu0 }
  0xf9   :  { %v138_v21 = vadd.f32 %v297_v15, %v137_v19  ;;  %v145_v24 = vsel %vm141_vm2, %v135_v17, %v143_v20 }
  0xfa   :  { %v331_v22 = vpop.f32.mrf.mxu0 }
  0xfb   :  { %vm142_vm3 = vcmp.gt.f32.partialorder %v138_v21, 0.0  ;;  %v144_v23 = vmul.f32 0.01, %v138_v21 }
  0xfd   :  { %v146_v25 = vsel %vm142_vm3, %v138_v21, %v144_v23 }
  0xfe   :  { %v147_v26 = vpack.c.bf16 %v146_v25, %v145_v24 }
 0x100   :  { %349 = vmatmul.mubr.bf16.vlgmr.msra.gmra.mxu1 %v147_v26 }
 0x1c0   :  { %v253_v28 = vpop.f32.mrf.mxu1 }
 0x1c1   :  { %v254_v29 = vadd.f32 %v301_v27, %v253_v28 }
 0x1c2   :  { %v350_v30 = vpop.f32.mrf.mxu1 }
 0x1c3   :  { %v262_v31 = vmul.f32 0.01, %v254_v29  ;;  %vm260_vm4 = vcmp.gt.f32.partialorder %v254_v29, 0.0 }
 0x1c4   :  { %v256_v33 = vpop.f32.mrf.mxu1 }
 0x1c5   :  { %v257_v34 = vadd.f32 %v301_v27, %v256_v33  ;;  %v264_v35 = vsel %vm260_vm4, %v254_v29, %v262_v31 }
 0x1c6   :  { %v351_v36 = vpop.f32.mrf.mxu1  ;;  %v273_v37 = vmul.f32 %v310_v32, %v264_v35 }
 0x1c7   :  { %v263_v38 = vmul.f32 0.01, %v257_v34  ;;  %vm261_vm5 = vcmp.gt.f32.partialorder %v257_v34, 0.0 }
 0x1c8   :  { %275 = vadd.xlane.f32.xlu0 %v273_v37 }
 0x1c9   :  { %v265_v39 = vsel %vm261_vm5, %v257_v34, %v263_v38 }
 0x1ca   :  { %v274_v40 = vmul.f32 %v310_v32, %v265_v39 }
 0x1cc   :  { %277 = vadd.xlane.f32.xlu0 %v274_v40 }
 0x251   :  { %v276_v42 = vpop.xlane.xlu0 %275 }
 0x252   :  { %v286_v43 = vadd.f32 %v311_v41, %v276_v42 }
 0x254   :  { %289 = vst.msk [vmem:[%s518_s7] sm:$0xff] %vm288_vm6, %v286_v43 }
 0x255   :  { %v278_v44 = vpop.xlane.xlu0 %277 }
 0x256   :  { %v287_v45 = vadd.f32 %v311_v41, %v278_v44 }
 0x258   :  { %290 = vst.msk [vmem:[%s518_s7 + $0x8] sm:$0xff] %vm288_vm6, %v287_v45 }
 0x259   :  { %295 = vsyncpa [#allocation4], 1 }
 0x25a   :  { %296 = vsyncpa [#allocation6], 1 }

// kernel: tpu_custom_call.1
= control target key start
LH: loop header
LB: loop body
LE: loop exit
PB: predicated region body
PF: predicated region fallthrough
CT: control target
= control target key end

     0   :  { %s511_s0 = inlined_call_operand.hbm [shape: f32[10,32], index: 0, kind: input, shape index: {}]   ;;  %s512_s1 = inlined_call_operand.hbm [shape: bf16[32,128], index: 1, kind: input, shape index: {}]   ;;  %s513_s2 = inlined_call_operand.vmem [shape: f32[1,128], index: 2, kind: input, shape index: {}]   ;;  %s514_s3 = inlined_call_operand.hbm [shape: bf16[128,128], index: 3, kind: input, shape index: {}]   ;;  %s515_s4 = inlined_call_operand.vmem [shape: f32[1,128], index: 4, kind: input, shape index: {}]   ;;  %s516_s5 = inlined_call_operand.vmem [shape: f32[1,128], index: 5, kind: input, shape index: {}]   ;;  %s517_s6 = inlined_call_operand.<no memory space> [shape: f32[1,1], index: 6, kind: input, shape index: {}]   ;;  %s518_s7 = inlined_call_operand.vmem [shape: f32[10,1], index: 7, kind: output, shape index: {}]  }
   0x1   :  { %v12_v0 = vstv %s517_s6 }
   0x2   :  { %13 = vst [vmem:[#allocation2] sm:$0x1] %v12_v0 }
   0x3   :  { %14 = vsyncpa [#allocation4], 0 }
   0x4   :  { %15 = vsyncpa [#allocation6], 0  ;;  %s435_s26 = smov [#allocation5]  }
   0x5   :  { %s33_s27 = sshll.u32 %s435_s26, 4  ;;  %s34_s27 = int_to_ptr.vmem [resolvable:$true] %s33_s27 }
   0x6   :  { %s379_s28 = scalar_lea.vmem %s34_s27, 256  ;;  %p384_p1 = scmp.lt.s32.totalorder %s34_s27, %s34_s27 }
   0x7   :  { %p380_p0 = scmp.ne.s32.totalorder %s34_s27, %s379_s28  ;;  %p385_p2 = scmp.lt.s32.totalorder %s379_s28, %s379_s28 }
   0x9   :  { %p386_p3 = por %p385_p2, %p384_p1 }
   0xb   :  { %p387_p4 = pnand %p386_p3, %p380_p0 }
   0xd   :  { %390 = shalt.err (!%p387_p4)
}
   0xe   :  { %s436_s29 = smov 64   ;;  %s437_s30 = smov 4  }
   0xf   :  { %39 = dma.hbm_to_vmem [thread:$0]  %s512_s1, 256, %s34_s27, [#allocation6], %s436_s29, %s436_s29, %s437_s30  }
  0x10   :  { %s438_s6 = smov [#allocation3]  }
  0x11   :  { %s21_s10 = sshll.u32 %s438_s6, 4  ;;  %s22_s10 = int_to_ptr.vmem [resolvable:$true] %s21_s10 }
  0x12   :  { %s399_s11 = scalar_lea.vmem %s22_s10, 256  ;;  %p404_p6 = scmp.lt.s32.totalorder %s22_s10, %s22_s10 }
  0x13   :  { %p400_p5 = scmp.ne.s32.totalorder %s22_s10, %s399_s11  ;;  %p405_p7 = scmp.lt.s32.totalorder %s399_s11, %s399_s11 }
  0x15   :  { %p406_p8 = por %p405_p7, %p404_p6 }
  0x17   :  { %p407_p9 = pnand %p406_p8, %p400_p5 }
  0x19   :  { %410 = shalt.err (!%p407_p9)
}
  0x1a   :  { %s439_s12 = smov 128   ;;  %s440_s13 = smov 8  }
  0x1b   :  { %27 = dma.hbm_to_vmem [thread:$0]  %s511_s0, 256, %s22_s10, [#allocation4], %s439_s12, %s439_s12, %s440_s13  }
  0x1c   :  { %s441_s16 = smov [#allocation7]  }
  0x1d   :  { %s47_s17 = sshll.u32 %s441_s16, 4  ;;  %s48_s17 = int_to_ptr.vmem [resolvable:$true] %s47_s17 }
  0x1e   :  { %s419_s1 = scalar_lea.vmem %s48_s17, 1024  ;;  %p424_p11 = scmp.lt.s32.totalorder %s48_s17, %s48_s17 }
  0x1f   :  { %p420_p10 = scmp.ne.s32.totalorder %s48_s17, %s419_s1  ;;  %p425_p12 = scmp.lt.s32.totalorder %s419_s1, %s419_s1 }
  0x21   :  { %p426_p13 = por %p425_p12, %p424_p11 }
  0x23   :  { %p427_p0 = pnand %p426_p13, %p420_p10 }
  0x25   :  { %430 = shalt.err (!%p427_p0)
}
  0x26   :  { %53 = dma.hbm_to_vmem [thread:$0]  %s514_s3, 1024, %s48_s17, [#allocation6], %s436_s29, %s436_s29, %s437_s30  }
  0x27   :  { %431 = dma.done.wait [#allocation4], 256  }
  0x28   :  { %432 = vsyncadd [#allocation4], 4294967040 }
  0x29   :  { %433 = dma.done.wait [#allocation6], 1280  }
  0x2a   :  { %434 = vsyncadd [#allocation6], 4294966016  ;;  %v442_v1 = vmov 0.0   ;;  %vm443_vm0 = vmmov 0   ;;  %v361_v2 = vld [vmem:[#allocation5 + $0x8] sm:$0xff]   ;;  %v362_v3 = vld [vmem:[#allocation5] sm:$0xff]  }
  0x2b   :  { %324 = vmatprep.subr.bf16.mxu0 %v442_v1  ;;  %328 = vmatprep.mubr.msk.bf16.mxu0 %vm443_vm0, %v442_v1  ;;  %v70_v4 = vld [vmem:[#allocation3] sm:$0xff]  ;;  %v71_v5 = vld [vmem:[#allocation3 + $0x8] sm:$0xff]  ;;  %v363_v6 = vld [vmem:[#allocation7 + $0x38] sm:$0xff]   ;;  %vm96_vm1 = vcmask 261120   ;;  %vm288_vm6 = vcmask 7168  }
  0x2c   :  { %332 = vmatprep.subr.bf16.mxu1 %v442_v1  ;;  %348 = vmatprep.mubr.msk.bf16.mxu1 %vm443_vm0, %v442_v1  ;;  %v72_v7 = vpack.c.bf16 %v71_v5, %v70_v4  ;;  %v364_v8 = vld [vmem:[#allocation7 + $0x30] sm:$0xff]   ;;  %v365_v9 = vld [vmem:[#allocation7 + $0x28] sm:$0xff]   ;;  %v366_v10 = vld [vmem:[#allocation7 + $0x20] sm:$0xff]  }
  0x2d   :  { %325 = vmatpush3.bf16.msra.mxu0 %v361_v2  ;;  %333 = vmatpush3.bf16.msra.mxu1 %v363_v6  ;;  %v367_v11 = vld [vmem:[#allocation7 + $0x18] sm:$0xff]   ;;  %v368_v12 = vld [vmem:[#allocation7 + $0x10] sm:$0xff]   ;;  %v369_v13 = vld [vmem:[#allocation7 + $0x8] sm:$0xff]  }
  0x2e   :  { %326 = vmatprep.subr.bf16.mxu0 %v442_v1  ;;  %334 = vmatprep.subr.bf16.mxu1 %v442_v1  ;;  %v370_v14 = vld [vmem:[#allocation7] sm:$0xff]   ;;  %v297_v15 = vld [vmem:[%s513_s2] ss:$0 sm:$0xff] }
  0x2f   :  { %v301_v27 = vld [vmem:[%s515_s4] ss:$0 sm:$0xff] }
  0x30   :  { %v310_v32 = vld [vmem:[%s516_s5] ss:$0 sm:$0xff] }
  0x31   :  { %327 = vmatpush3.bf16.msra.mxu0 %v362_v3  ;;  %335 = vmatpush3.bf16.msra.mxu1 %v364_v8  ;;  %v311_v41 = vld [vmem:[#allocation2] ss:$0 sm:$0xff] }
  0x32   :  { %336 = vmatprep.subr.bf16.mxu1 %v442_v1 }
  0x34   :  { %329 = vmatmul.mubr.msk.bf16.vlgmr.msra.gmra.mxu0 %vm96_vm1, %v72_v7 }
  0x35   :  { %337 = vmatpush3.bf16.msra.mxu1 %v365_v9 }
  0x36   :  { %338 = vmatprep.subr.bf16.mxu1 %v442_v1 }
  0x39   :  { %339 = vmatpush3.bf16.msra.mxu1 %v366_v10 }
  0x3a   :  { %340 = vmatprep.subr.bf16.mxu1 %v442_v1 }
  0x3d   :  { %341 = vmatpush3.bf16.msra.mxu1 %v367_v11 }
  0x3e   :  { %342 = vmatprep.subr.bf16.mxu1 %v442_v1 }
  0x41   :  { %343 = vmatpush3.bf16.msra.mxu1 %v368_v12 }
  0x42   :  { %344 = vmatprep.subr.bf16.mxu1 %v442_v1 }
  0x45   :  { %345 = vmatpush3.bf16.msra.mxu1 %v369_v13 }
  0x46   :  { %346 = vmatprep.subr.bf16.mxu1 %v442_v1 }
  0x49   :  { %347 = vmatpush3.bf16.msra.mxu1 %v370_v14 }
  0xf4   :  { %v134_v16 = vpop.f32.mrf.mxu0 }
  0xf5   :  { %v135_v17 = vadd.f32 %v297_v15, %v134_v16 }
  0xf6   :  { %v330_v18 = vpop.f32.mrf.mxu0 }
  0xf7   :  { %v143_v20 = vmul.f32 0.01, %v135_v17  ;;  %vm141_vm2 = vcmp.gt.f32.partialorder %v135_v17, 0.0 }
  0xf8   :  { %v137_v19 = vpop.f32.mrf.mxu0 }
  0xf9   :  { %v138_v21 = vadd.f32 %v297_v15, %v137_v19  ;;  %v145_v24 = vsel %vm141_vm2, %v135_v17, %v143_v20 }
  0xfa   :  { %v331_v22 = vpop.f32.mrf.mxu0 }
  0xfb   :  { %vm142_vm3 = vcmp.gt.f32.partialorder %v138_v21, 0.0  ;;  %v144_v23 = vmul.f32 0.01, %v138_v21 }
  0xfd   :  { %v146_v25 = vsel %vm142_vm3, %v138_v21, %v144_v23 }
  0xfe   :  { %v147_v26 = vpack.c.bf16 %v146_v25, %v145_v24 }
 0x100   :  { %349 = vmatmul.mubr.bf16.vlgmr.msra.gmra.mxu1 %v147_v26 }
 0x1c0   :  { %v253_v28 = vpop.f32.mrf.mxu1 }
 0x1c1   :  { %v254_v29 = vadd.f32 %v301_v27, %v253_v28 }
 0x1c2   :  { %v350_v30 = vpop.f32.mrf.mxu1 }
 0x1c3   :  { %v262_v31 = vmul.f32 0.01, %v254_v29  ;;  %vm260_vm4 = vcmp.gt.f32.partialorder %v254_v29, 0.0 }
 0x1c4   :  { %v256_v33 = vpop.f32.mrf.mxu1 }
 0x1c5   :  { %v257_v34 = vadd.f32 %v301_v27, %v256_v33  ;;  %v264_v35 = vsel %vm260_vm4, %v254_v29, %v262_v31 }
 0x1c6   :  { %v351_v36 = vpop.f32.mrf.mxu1  ;;  %v273_v37 = vmul.f32 %v310_v32, %v264_v35 }
 0x1c7   :  { %v263_v38 = vmul.f32 0.01, %v257_v34  ;;  %vm261_vm5 = vcmp.gt.f32.partialorder %v257_v34, 0.0 }
 0x1c8   :  { %275 = vadd.xlane.f32.xlu0 %v273_v37 }
 0x1c9   :  { %v265_v39 = vsel %vm261_vm5, %v257_v34, %v263_v38 }
 0x1ca   :  { %v274_v40 = vmul.f32 %v310_v32, %v265_v39 }
 0x1cc   :  { %277 = vadd.xlane.f32.xlu0 %v274_v40 }
 0x251   :  { %v276_v42 = vpop.xlane.xlu0 %275 }
 0x252   :  { %v286_v43 = vadd.f32 %v311_v41, %v276_v42 }
 0x254   :  { %289 = vst.msk [vmem:[%s518_s7] sm:$0xff] %vm288_vm6, %v286_v43 }
 0x255   :  { %v278_v44 = vpop.xlane.xlu0 %277 }
 0x256   :  { %v287_v45 = vadd.f32 %v311_v41, %v278_v44 }
 0x258   :  { %290 = vst.msk [vmem:[%s518_s7 + $0x8] sm:$0xff] %vm288_vm6, %v287_v45 }
 0x259   :  { %295 = vsyncpa [#allocation4], 1 }
 0x25a   :  { %296 = vsyncpa [#allocation6], 1 }

</bundles_post_ra>
